<compile_context>
chip_gen: v5e
topology: v5e:2x2
jax: 0.10.0
libtpu: 0.0.40
codegen_flags: <defaults>
</compile_context>

<pallas_src>
import functools

import jax
import jax.numpy as jnp
from jax import lax
from jax.experimental import pallas as pl
from jax.experimental.pallas import tpu as pltpu

NEG_SLOPE = 0.01                                 # nn.LeakyReLU default
BN_EPS = 1e-5                                    # nn.BatchNorm1d default
DROP_P = 0.2                                     # nn.Dropout(0.2)
INV_KEEP = 1.0 / (1.0 - DROP_P)
KEEP_THRESHOLD_U24 = int((1.0 - DROP_P) * (1 << 24))
LANE = 128

# lowbias32-style mixing constants, expressed as signed 32-bit Python ints so
# jnp.int32(...) never overflows (all arithmetic below wraps mod 2^32).
_MIX1 = 0x7FEB352D
_MIX2 = 0x846CA68B - (1 << 32)
_GOLD = 0x9E3779B9 - (1 << 32)


def _round_up(n, m):
    return ((n + m - 1) // m) * m


def _pick_tile_n(batch, d_in_p, d_out_p, budget_bytes=12 * 1024 * 1024):
    """Largest 128-multiple feature tile that divides d_out_p and keeps the
    double-buffered VMEM footprint under `budget_bytes`."""
    for tn in (512, 384, 256, 128):
        if d_out_p % tn:
            continue
        need = (2 * d_in_p * tn * 2        # w tile (bf16), double-buffered
                + 2 * batch * tn * 4       # out tile (f32), double-buffered
                + 2 * batch * d_in_p * 2   # resident x block (counted 2x)
                + 4 * tn * 4)              # gamma / beta tiles
        if need <= budget_bytes:
            return tn
    return 128


def nonlinear_layer_kernel(seed_ref, x_ref, w_ref, gamma_ref, beta_ref, o_ref,
                           *, d_out_total):
    # ---- Linear (bias=False): bf16 tiles on the MXU, f32 accumulation ----
    y = jnp.dot(x_ref[...], w_ref[...], preferred_element_type=jnp.float32)

    # ---- BatchNorm1d (training): one-pass biased batch stats over axis 0 ----
    inv_b = jnp.float32(1.0 / y.shape[0])
    s1 = jnp.sum(y, axis=0, keepdims=True)
    s2 = jnp.sum(y * y, axis=0, keepdims=True)
    mean = s1 * inv_b
    var = s2 * inv_b - mean * mean
    # Fold the BN affine into a single per-feature scale / bias FMA.
    scale = gamma_ref[...] * lax.rsqrt(var + jnp.float32(BN_EPS))
    bias = beta_ref[...] - mean * scale
    y = y * scale + bias

    # ---- Dropout(0.2) mask: stateless per-element hash (tiling-invariant) ----
    # TODO(synk): mask pattern is not bit-identical to torch's RNG (same
    # Bernoulli(keep=0.8) inverted-dropout semantics, different random stream).
    tn = y.shape[1]
    rows = lax.broadcasted_iota(jnp.int32, y.shape, 0)
    cols = lax.broadcasted_iota(jnp.int32, y.shape, 1) + pl.program_id(0) * tn
    h = rows * d_out_total + cols                  # global element index
    h = h + seed_ref[0] * jnp.int32(_GOLD)
    # (x >> k) & ((1 << (32 - k)) - 1)  ==  32-bit logical right shift.
    h = h ^ ((h >> 16) & 0xFFFF)
    h = h * jnp.int32(_MIX1)
    h = h ^ ((h >> 15) & 0x1FFFF)
    h = h * jnp.int32(_MIX2)
    h = h ^ ((h >> 16) & 0xFFFF)
    u24 = (h >> 8) & 0xFFFFFF                      # uniform in [0, 2^24)
    keep = u24 < KEEP_THRESHOLD_U24

    # ---- Fused LeakyReLU + inverted dropout: one multiplier per element ----
    mult = (jnp.where(keep, jnp.float32(INV_KEEP), jnp.float32(0.0))
            * jnp.where(y >= 0, jnp.float32(1.0), jnp.float32(NEG_SLOPE)))
    o_ref[...] = (y * mult).astype(o_ref.dtype)


@jax.jit
def nonlinear_layer(x, w, gamma, beta, seed):
    """x: [B, D_in] f32, w: [D_in, D_out] f32 (transpose of torch layout),
    gamma/beta: [1, D_out] f32, seed: [1] i32  ->  [B, D_out] f32."""
    batch, d_in = x.shape
    d_out = w.shape[1]

    # Lane-dense padding: matmul K dim and output feature dim become
    # multiples of 128 so loads / stores are unmasked full vregs.
    d_in_p = _round_up(d_in, LANE)
    d_out_p = _round_up(d_out, LANE)
    if d_in_p != d_in:
        x = jnp.pad(x, ((0, 0), (0, d_in_p - d_in)))
        w = jnp.pad(w, ((0, d_in_p - d_in), (0, 0)))
    if d_out_p != d_out:
        w = jnp.pad(w, ((0, 0), (0, d_out_p - d_out)))
        gamma = jnp.pad(gamma, ((0, 0), (0, d_out_p - d_out)),
                        constant_values=1.0)
        beta = jnp.pad(beta, ((0, 0), (0, d_out_p - d_out)))

    # bf16 matmul inputs: halves HBM/VMEM traffic and doubles MXU throughput
    # on v6e / v7x; accumulation (and the whole epilogue) stays f32.
    xb = x.astype(jnp.bfloat16)
    wb = w.astype(jnp.bfloat16)

    tn = _pick_tile_n(batch, d_in_p, d_out_p)
    grid = (d_out_p // tn,)

    y = pl.pallas_call(
        functools.partial(nonlinear_layer_kernel, d_out_total=d_out_p),
        out_shape=jax.ShapeDtypeStruct((batch, d_out_p), jnp.float32),
        grid=grid,
        in_specs=[
            pl.BlockSpec(memory_space=pltpu.SMEM),              # seed (scalar)
            pl.BlockSpec((batch, d_in_p), lambda j: (0, 0)),    # x (resident)
            pl.BlockSpec((d_in_p, tn), lambda j: (0, j)),       # w tile
            pl.BlockSpec((1, tn), lambda j: (0, j)),            # gamma tile
            pl.BlockSpec((1, tn), lambda j: (0, j)),            # beta tile
        ],
        out_specs=pl.BlockSpec((batch, tn), lambda j: (0, j)),
        compiler_params=pltpu.CompilerParams(
            dimension_semantics=("parallel",)),   # v7x: split tiles over 2 TCs
    )(seed, xb, wb, gamma, beta)

    return y[:, :d_out]


if __name__ == "__main__":
    # Deliberately non-128-multiple dims: exercises the lane-dense padding and
    # a multi-step (3-tile) feature grid while staying small.
    B, D_IN, D_OUT = 8, 200, 300

    key = jax.random.PRNGKey(0)
    kx, kw = jax.random.split(key)

    x = jax.random.normal(kx, (B, D_IN), dtype=jnp.float32)
    # PyTorch-style Kaiming-uniform bound for nn.Linear (bias=False) weight;
    # BatchNorm1d affine init: gamma=1, beta=0.
    bound = 1.0 / (D_IN ** 0.5)
    w = jax.random.uniform(kw, (D_IN, D_OUT), minval=-bound, maxval=bound,
                           dtype=jnp.float32)
    gamma = jnp.ones((1, D_OUT), jnp.float32)
    beta = jnp.zeros((1, D_OUT), jnp.float32)
    seed = jnp.array([0], dtype=jnp.int32)

    y = nonlinear_layer(x, w, gamma, beta, seed)
    jax.block_until_ready(y)

    assert y.shape == (B, D_OUT) and y.dtype == jnp.float32
    assert bool(jnp.all(jnp.isfinite(y)))
    # ~20% of outputs should be exactly zero (dropped); very loose bounds.
    drop_frac = float(jnp.mean((y == 0.0).astype(jnp.float32)))
    assert 0.05 < drop_frac < 0.40, drop_frac
    print("KERNEL_OK")
</pallas_src>

<mosaic_0001>
module attributes {stable_mosaic.version = 11 : i64} {
  func.func @nonlinear_layer_kernel(%arg0: i32, %arg1: memref<1xi32, #tpu.memory_space<smem>>, %arg2: memref<8x256xbf16, #tpu.memory_space<vmem>>, %arg3: memref<256x384xbf16, #tpu.memory_space<vmem>>, %arg4: memref<1x384xf32, #tpu.memory_space<vmem>>, %arg5: memref<1x384xf32, #tpu.memory_space<vmem>>, %arg6: memref<8x384xf32, #tpu.memory_space<vmem>>) attributes {dimension_semantics = [#tpu.dimension_semantics<parallel>], iteration_bounds = array<i64: 1>, scalar_prefetch = 0 : i64, scratch_operands = 0 : i64, tpu.core_type = #tpu.core_type<tc>, window_params = [{transform_indices = @transform_0, window_bounds = array<i64: 1>}, {pipeline_mode = #tpu.pipeline_mode<synchronous>, transform_indices = @transform_1, window_bounds = array<i64: 8, 256>}, {transform_indices = @transform_2, window_bounds = array<i64: 256, 384>}, {transform_indices = @transform_3, window_bounds = array<i64: 1, 384>}, {transform_indices = @transform_4, window_bounds = array<i64: 1, 384>}, {transform_indices = @transform_5, window_bounds = array<i64: 8, 384>}]} {
    %c0 = arith.constant 0 : index
    %c0_0 = arith.constant 0 : index
    %0 = vector.load %arg2[%c0, %c0_0] : memref<8x256xbf16, #tpu.memory_space<vmem>>, vector<8x256xbf16>
    %c0_1 = arith.constant 0 : index
    %c0_2 = arith.constant 0 : index
    %1 = vector.load %arg3[%c0_1, %c0_2] : memref<256x384xbf16, #tpu.memory_space<vmem>>, vector<256x384xbf16>
    %cst = arith.constant dense<0.000000e+00> : vector<8x384xf32>
    %2 = tpu.matmul %0, %1, %cst {dimension_numbers = #tpu.dot_dimension_numbers<[1], [0], [0], [1], [0, 0, 1, 1], [], []>} : vector<8x256xbf16>, vector<256x384xbf16>, vector<8x384xf32> -> vector<8x384xf32>
    %cst_3 = arith.constant dense<0.000000e+00> : vector<384xf32>
    %3 = vector.multi_reduction <add>, %2, %cst_3 [0] : vector<8x384xf32> to vector<384xf32>
    %4 = vector.shape_cast %3 : vector<384xf32> to vector<1x384xf32>
    %5 = arith.mulf %2, %2 : vector<8x384xf32>
    %cst_4 = arith.constant dense<0.000000e+00> : vector<384xf32>
    %6 = vector.multi_reduction <add>, %5, %cst_4 [0] : vector<8x384xf32> to vector<384xf32>
    %7 = vector.shape_cast %6 : vector<384xf32> to vector<1x384xf32>
    %cst_5 = arith.constant 1.250000e-01 : f32
    %8 = vector.broadcast %cst_5 : f32 to vector<1x384xf32>
    %9 = arith.mulf %4, %8 : vector<1x384xf32>
    %cst_6 = arith.constant 1.250000e-01 : f32
    %10 = vector.broadcast %cst_6 : f32 to vector<1x384xf32>
    %11 = arith.mulf %7, %10 : vector<1x384xf32>
    %12 = arith.mulf %9, %9 : vector<1x384xf32>
    %13 = arith.subf %11, %12 : vector<1x384xf32>
    %c0_7 = arith.constant 0 : index
    %c0_8 = arith.constant 0 : index
    %14 = vector.load %arg4[%c0_7, %c0_8] : memref<1x384xf32, #tpu.memory_space<vmem>>, vector<1x384xf32>
    %cst_9 = arith.constant 9.99999974E-6 : f32
    %15 = vector.broadcast %cst_9 : f32 to vector<1x384xf32>
    %16 = arith.addf %13, %15 : vector<1x384xf32>
    %17 = math.rsqrt %16 : vector<1x384xf32>
    %18 = arith.mulf %14, %17 : vector<1x384xf32>
    %c0_10 = arith.constant 0 : index
    %c0_11 = arith.constant 0 : index
    %19 = vector.load %arg5[%c0_10, %c0_11] : memref<1x384xf32, #tpu.memory_space<vmem>>, vector<1x384xf32>
    %20 = arith.mulf %9, %18 : vector<1x384xf32>
    %21 = arith.subf %19, %20 : vector<1x384xf32>
    %22 = vector.broadcast %18 : vector<1x384xf32> to vector<8x384xf32>
    %23 = arith.mulf %2, %22 : vector<8x384xf32>
    %24 = vector.broadcast %21 : vector<1x384xf32> to vector<8x384xf32>
    %25 = arith.addf %23, %24 : vector<8x384xf32>
    %26 = tpu.iota {dimensions = array<i32: 0>} : vector<8x384xi32>
    %27 = tpu.iota {dimensions = array<i32: 1>} : vector<8x384xi32>
    %c384_i32 = arith.constant 384 : i32
    %28 = arith.muli %arg0, %c384_i32 : i32
    %29 = vector.broadcast %28 : i32 to vector<8x384xi32>
    %30 = arith.addi %27, %29 : vector<8x384xi32>
    %c384_i32_12 = arith.constant 384 : i32
    %31 = vector.broadcast %c384_i32_12 : i32 to vector<8x384xi32>
    %32 = arith.muli %26, %31 : vector<8x384xi32>
    %33 = arith.addi %32, %30 : vector<8x384xi32>
    %c0_13 = arith.constant 0 : index
    %34 = memref.load %arg1[%c0_13] : memref<1xi32, #tpu.memory_space<smem>>
    %c-1640531527_i32 = arith.constant -1640531527 : i32
    %35 = arith.muli %34, %c-1640531527_i32 : i32
    %36 = vector.broadcast %35 : i32 to vector<8x384xi32>
    %37 = arith.addi %33, %36 : vector<8x384xi32>
    %c16_i32 = arith.constant 16 : i32
    %38 = vector.broadcast %c16_i32 : i32 to vector<8x384xi32>
    %39 = arith.shrsi %37, %38 : vector<8x384xi32>
    %c65535_i32 = arith.constant 65535 : i32
    %40 = vector.broadcast %c65535_i32 : i32 to vector<8x384xi32>
    %41 = arith.andi %39, %40 : vector<8x384xi32>
    %42 = arith.xori %37, %41 : vector<8x384xi32>
    %c2146121005_i32 = arith.constant 2146121005 : i32
    %43 = vector.broadcast %c2146121005_i32 : i32 to vector<8x384xi32>
    %44 = arith.muli %42, %43 : vector<8x384xi32>
    %c15_i32 = arith.constant 15 : i32
    %45 = vector.broadcast %c15_i32 : i32 to vector<8x384xi32>
    %46 = arith.shrsi %44, %45 : vector<8x384xi32>
    %c131071_i32 = arith.constant 131071 : i32
    %47 = vector.broadcast %c131071_i32 : i32 to vector<8x384xi32>
    %48 = arith.andi %46, %47 : vector<8x384xi32>
    %49 = arith.xori %44, %48 : vector<8x384xi32>
    %c-2073254261_i32 = arith.constant -2073254261 : i32
    %50 = vector.broadcast %c-2073254261_i32 : i32 to vector<8x384xi32>
    %51 = arith.muli %49, %50 : vector<8x384xi32>
    %c16_i32_14 = arith.constant 16 : i32
    %52 = vector.broadcast %c16_i32_14 : i32 to vector<8x384xi32>
    %53 = arith.shrsi %51, %52 : vector<8x384xi32>
    %c65535_i32_15 = arith.constant 65535 : i32
    %54 = vector.broadcast %c65535_i32_15 : i32 to vector<8x384xi32>
    %55 = arith.andi %53, %54 : vector<8x384xi32>
    %56 = arith.xori %51, %55 : vector<8x384xi32>
    %c8_i32 = arith.constant 8 : i32
    %57 = vector.broadcast %c8_i32 : i32 to vector<8x384xi32>
    %58 = arith.shrsi %56, %57 : vector<8x384xi32>
    %c16777215_i32 = arith.constant 16777215 : i32
    %59 = vector.broadcast %c16777215_i32 : i32 to vector<8x384xi32>
    %60 = arith.andi %58, %59 : vector<8x384xi32>
    %c13421772_i32 = arith.constant 13421772 : i32
    %61 = vector.broadcast %c13421772_i32 : i32 to vector<8x384xi32>
    %62 = arith.cmpi slt, %60, %61 : vector<8x384xi32>
    %cst_16 = arith.constant 1.250000e+00 : f32
    %cst_17 = arith.constant 0.000000e+00 : f32
    %63 = vector.broadcast %cst_16 : f32 to vector<8x384xf32>
    %64 = vector.broadcast %cst_17 : f32 to vector<8x384xf32>
    %65 = arith.select %62, %63, %64 : vector<8x384xi1>, vector<8x384xf32>
    %cst_18 = arith.constant 0.000000e+00 : f32
    %66 = vector.broadcast %cst_18 : f32 to vector<8x384xf32>
    %67 = arith.cmpf oge, %25, %66 : vector<8x384xf32>
    %cst_19 = arith.constant 1.000000e+00 : f32
    %cst_20 = arith.constant 0.00999999977 : f32
    %68 = vector.broadcast %cst_19 : f32 to vector<8x384xf32>
    %69 = vector.broadcast %cst_20 : f32 to vector<8x384xf32>
    %70 = arith.select %67, %68, %69 : vector<8x384xi1>, vector<8x384xf32>
    %71 = arith.mulf %65, %70 : vector<8x384xf32>
    %72 = arith.mulf %25, %71 : vector<8x384xf32>
    %c0_21 = arith.constant 0 : index
    %c0_22 = arith.constant 0 : index
    %73 = vector.load %arg6[%c0_21, %c0_22] : memref<8x384xf32, #tpu.memory_space<vmem>>, vector<8x384xf32>
    tpu.vector_store %arg6[%c0_21, %c0_22], %72 {strides = array<i32>} : memref<8x384xf32, #tpu.memory_space<vmem>>, vector<8x384xf32>,
    return
  }
  func.func @transform_0(%arg0: i32) -> i32 {
    %c0_i32 = arith.constant 0 : i32
    %c0_i32_0 = arith.constant 0 : i32
    return %c0_i32 : i32
  }
  func.func @transform_1(%arg0: i32) -> (i32, i32) {
    %c0_i32 = arith.constant 0 : i32
    %c0_i32_0 = arith.constant 0 : i32
    %c0_i32_1 = arith.constant 0 : i32
    return %c0_i32, %c0_i32_0 : i32, i32
  }
  func.func @transform_2(%arg0: i32) -> (i32, i32) {
    %c0_i32 = arith.constant 0 : i32
    %c0_i32_0 = arith.constant 0 : i32
    return %c0_i32, %arg0 : i32, i32
  }
  func.func @transform_3(%arg0: i32) -> (i32, i32) {
    %c0_i32 = arith.constant 0 : i32
    %c0_i32_0 = arith.constant 0 : i32
    return %c0_i32, %arg0 : i32, i32
  }
  func.func @transform_4(%arg0: i32) -> (i32, i32) {
    %c0_i32 = arith.constant 0 : i32
    %c0_i32_0 = arith.constant 0 : i32
    return %c0_i32, %arg0 : i32, i32
  }
  func.func @transform_5(%arg0: i32) -> (i32, i32) {
    %c0_i32 = arith.constant 0 : i32
    %c0_i32_0 = arith.constant 0 : i32
    return %c0_i32, %arg0 : i32, i32
  }
}

</mosaic_0001>

<bundles_post_ra>
// kernel: nonlinear_layer.1
= control target key start
LH: loop header
LB: loop body
LE: loop exit
PB: predicated region body
PF: predicated region fallthrough
CT: control target
= control target key end

     0   :  { %s1337_s0 = inlined_call_operand.<no memory space> [shape: s32[1], index: 0, kind: input, shape index: {}]   ;;  %s1338_s1 = inlined_call_operand.vmem [shape: bf16[8,256], index: 1, kind: input, shape index: {}]   ;;  %s1339_s2 = inlined_call_operand.vmem [shape: bf16[256,384], index: 2, kind: input, shape index: {}]   ;;  %s1340_s3 = inlined_call_operand.vmem [shape: f32[1,384], index: 3, kind: input, shape index: {}]   ;;  %s1341_s4 = inlined_call_operand.vmem [shape: f32[1,384], index: 4, kind: input, shape index: {}]   ;;  %s1342_s5 = inlined_call_operand.hbm [shape: f32[8,384], index: 5, kind: output, shape index: {}]  }
   0x1   :  { %v740_v0 = vld [vmem:[%s1339_s2 + $0xa8] sm:$0xf]  ;;  %v880_v1 = vld [vmem:[%s1339_s2 + $0xb0] sm:$0xf0]  ;;  %v879_v5 = vld [vmem:[%s1339_s2 + $0xac] sm:$0xf] }
   0x2   :  { %v836_v2 = vld [vmem:[%s1339_s2 + $0x168] sm:$0xf]  ;;  %v741_v3 = vor.u32 %v880_v1, %v740_v0  ;;  %v904_v4 = vld [vmem:[%s1339_s2 + $0x170] sm:$0xf0]  ;;  %v742_v6 = vld [vmem:[%s1339_s2 + $0xb4] sm:$0xf0] }
   0x3   :  { %v837_v7 = vor.u32 %v904_v4, %v836_v2  ;;  %v745_v8 = vor.u32 %v879_v5, %v742_v6  ;;  %v903_v9 = vld [vmem:[%s1339_s2 + $0x16c] sm:$0xf]  ;;  %v838_v10 = vld [vmem:[%s1339_s2 + $0x174] sm:$0xf0]  ;;  %v728_v11 = vld [vmem:[%s1339_s2 + $0x90] sm:$0xf] }
   0x4   :  { %350 = vmatpush.bf16.msra.mxu0 %v741_v3  ;;  %v841_v12 = vor.u32 %v903_v9, %v838_v10  ;;  %v877_v13 = vld [vmem:[%s1339_s2 + $0x98] sm:$0xf0]  ;;  %v824_v14 = vld [vmem:[%s1339_s2 + $0x150] sm:$0xf]  ;;  %v876_v18 = vld [vmem:[%s1339_s2 + $0x94] sm:$0xf] }
   0x5   :  { %v901_v15 = vld [vmem:[%s1339_s2 + $0x158] sm:$0xf0]  ;;  %363 = vmatpush.bf16.msra.mxu1 %v837_v7  ;;  %376 = vmatpush.bf16.msra.mxu2 %v745_v8  ;;  %v729_v16 = vor.u32 %v877_v13, %v728_v11  ;;  %v730_v19 = vld [vmem:[%s1339_s2 + $0x9c] sm:$0xf0]  ;;  %v900_v20 = vld [vmem:[%s1339_s2 + $0x154] sm:$0xf] }
   0x6   :  { %v825_v17 = vor.u32 %v901_v15, %v824_v14  ;;  %389 = vmatpush.bf16.msra.mxu3 %v841_v12  ;;  %v733_v21 = vor.u32 %v876_v18, %v730_v19  ;;  %v826_v22 = vld [vmem:[%s1339_s2 + $0x15c] sm:$0xf0]  ;;  %v716_v23 = vld [vmem:[%s1339_s2 + $0x78] sm:$0xf]  ;;  %v874_v24 = vld [vmem:[%s1339_s2 + $0x80] sm:$0xf0] }
   0x7   :  { %v829_v25 = vor.u32 %v900_v20, %v826_v22  ;;  %v812_v26 = vld [vmem:[%s1339_s2 + $0x138] sm:$0xf]  ;;  %v898_v27 = vld [vmem:[%s1339_s2 + $0x140] sm:$0xf0]  ;;  %v873_v28 = vld [vmem:[%s1339_s2 + $0x7c] sm:$0xf]  ;;  %v717_v29 = vor.u32 %v874_v24, %v716_v23 }
   0x8   :  { %351 = vmatpush.bf16.msra.mxu0 %v729_v16  ;;  %v718_v30 = vld [vmem:[%s1339_s2 + $0x84] sm:$0xf0]  ;;  %v897_v31 = vld [vmem:[%s1339_s2 + $0x13c] sm:$0xf]  ;;  %v813_v33 = vor.u32 %v898_v27, %v812_v26  ;;  %v704_v35 = vld [vmem:[%s1339_s2 + $0x60] sm:$0xf] }
   0x9   :  { %v814_v32 = vld [vmem:[%s1339_s2 + $0x144] sm:$0xf0]  ;;  %364 = vmatpush.bf16.msra.mxu1 %v825_v17  ;;  %377 = vmatpush.bf16.msra.mxu2 %v733_v21  ;;  %v721_v34 = vor.u32 %v873_v28, %v718_v30  ;;  %v871_v36 = vld [vmem:[%s1339_s2 + $0x68] sm:$0xf0]  ;;  %v800_v37 = vld [vmem:[%s1339_s2 + $0x120] sm:$0xf] }
   0xa   :  { %390 = vmatpush.bf16.msra.mxu3 %v829_v25  ;;  %v817_v38 = vor.u32 %v897_v31, %v814_v32  ;;  %v895_v39 = vld [vmem:[%s1339_s2 + $0x128] sm:$0xf0]  ;;  %v870_v40 = vld [vmem:[%s1339_s2 + $0x64] sm:$0xf]  ;;  %v706_v41 = vld [vmem:[%s1339_s2 + $0x6c] sm:$0xf0]  ;;  %v705_v44 = vor.u32 %v871_v36, %v704_v35 }
   0xb   :  { %v894_v42 = vld [vmem:[%s1339_s2 + $0x124] sm:$0xf]  ;;  %v802_v43 = vld [vmem:[%s1339_s2 + $0x12c] sm:$0xf0]  ;;  %v801_v45 = vor.u32 %v895_v39, %v800_v37  ;;  %v709_v46 = vor.u32 %v870_v40, %v706_v41  ;;  %v692_v47 = vld [vmem:[%s1339_s2 + $0x48] sm:$0xf] }
   0xc   :  { %352 = vmatpush.bf16.msra.mxu0 %v717_v29  ;;  %v868_v48 = vld [vmem:[%s1339_s2 + $0x50] sm:$0xf0]  ;;  %v788_v49 = vld [vmem:[%s1339_s2 + $0x108] sm:$0xf]  ;;  %v805_v50 = vor.u32 %v894_v42, %v802_v43  ;;  %v867_v52 = vld [vmem:[%s1339_s2 + $0x4c] sm:$0xf] }
   0xd   :  { %365 = vmatpush.bf16.msra.mxu1 %v813_v33  ;;  %378 = vmatpush.bf16.msra.mxu2 %v721_v34  ;;  %v892_v51 = vld [vmem:[%s1339_s2 + $0x110] sm:$0xf0]  ;;  %v694_v53 = vld [vmem:[%s1339_s2 + $0x54] sm:$0xf0]  ;;  %v891_v54 = vld [vmem:[%s1339_s2 + $0x10c] sm:$0xf]  ;;  %v693_v56 = vor.u32 %v868_v48, %v692_v47 }
   0xe   :  { %391 = vmatpush.bf16.msra.mxu3 %v817_v38  ;;  %v790_v55 = vld [vmem:[%s1339_s2 + $0x114] sm:$0xf0]  ;;  %v789_v57 = vor.u32 %v892_v51, %v788_v49  ;;  %v697_v58 = vor.u32 %v867_v52, %v694_v53  ;;  %v680_v59 = vld [vmem:[%s1339_s2 + $0x30] sm:$0xf]  ;;  %v865_v60 = vld [vmem:[%s1339_s2 + $0x38] sm:$0xf0] }
   0xf   :  { %v776_v61 = vld [vmem:[%s1339_s2 + $0xf0] sm:$0xf]  ;;  %v793_v62 = vor.u32 %v891_v54, %v790_v55  ;;  %v889_v63 = vld [vmem:[%s1339_s2 + $0xf8] sm:$0xf0]  ;;  %v864_v0 = vld [vmem:[%s1339_s2 + $0x34] sm:$0xf]  ;;  %v681_v4 = vor.u32 %v865_v60, %v680_v59 }
  0x10   :  { %353 = vmatpush.bf16.msra.mxu0 %v705_v44  ;;  %v682_v1 = vld [vmem:[%s1339_s2 + $0x3c] sm:$0xf0]  ;;  %v888_v2 = vld [vmem:[%s1339_s2 + $0xf4] sm:$0xf]  ;;  %v777_v5 = vor.u32 %v889_v63, %v776_v61  ;;  %v668_v7 = vld [vmem:[%s1339_s2 + $0x18] sm:$0xf] }
  0x11   :  { %366 = vmatpush.bf16.msra.mxu1 %v801_v45  ;;  %379 = vmatpush.bf16.msra.mxu2 %v709_v46  ;;  %v778_v3 = vld [vmem:[%s1339_s2 + $0xfc] sm:$0xf0]  ;;  %v685_v6 = vor.u32 %v864_v0, %v682_v1  ;;  %v862_v8 = vld [vmem:[%s1339_s2 + $0x20] sm:$0xf0]  ;;  %v764_v9 = vld [vmem:[%s1339_s2 + $0xd8] sm:$0xf] }
  0x12   :  { %392 = vmatpush.bf16.msra.mxu3 %v805_v50  ;;  %v781_v10 = vor.u32 %v888_v2, %v778_v3  ;;  %v886_v11 = vld [vmem:[%s1339_s2 + $0xe0] sm:$0xf0]  ;;  %v861_v12 = vld [vmem:[%s1339_s2 + $0x1c] sm:$0xf]  ;;  %v670_v13 = vld [vmem:[%s1339_s2 + $0x24] sm:$0xf0]  ;;  %v669_v16 = vor.u32 %v862_v8, %v668_v7 }
  0x13   :  { %v885_v14 = vld [vmem:[%s1339_s2 + $0xdc] sm:$0xf]  ;;  %v766_v15 = vld [vmem:[%s1339_s2 + $0xe4] sm:$0xf0]  ;;  %v656_v17 = vld [vmem:[%s1339_s2] sm:$0xf]  ;;  %v765_v19 = vor.u32 %v886_v11, %v764_v9  ;;  %v673_v20 = vor.u32 %v861_v12, %v670_v13 }
  0x14   :  { %354 = vmatpush.bf16.msra.mxu0 %v693_v56  ;;  %v22_v18 = vld [vmem:[%s1338_s1] sm:$0xff]  ;;  %v859_v21 = vld [vmem:[%s1339_s2 + $0x8] sm:$0xf0]  ;;  %v769_v24 = vor.u32 %v885_v14, %v766_v15  ;;  %v658_v26 = vld [vmem:[%s1339_s2 + $0xc] sm:$0xf0] }
  0x15   :  { %367 = vmatpush.bf16.msra.mxu1 %v789_v57  ;;  %380 = vmatpush.bf16.msra.mxu2 %v697_v58  ;;  %v752_v22 = vld [vmem:[%s1339_s2 + $0xc0] sm:$0xf]  ;;  %v883_v23 = vld [vmem:[%s1339_s2 + $0xc8] sm:$0xf0]  ;;  %v858_v25 = vld [vmem:[%s1339_s2 + $0x4] sm:$0xf]  ;;  %v88_v31 = vunpack.c.l.b16 %v22_v18  ;;  %v657_v32 = vor.u32 %v859_v21, %v656_v17  ;;  %v89_v35 = vunpack.c.h.b16 %v22_v18 }
  0x16   :  { %393 = vmatpush.bf16.msra.mxu3 %v793_v62  ;;  %v882_v27 = vld [vmem:[%s1339_s2 + $0xc4] sm:$0xf]  ;;  %v754_v28 = vld [vmem:[%s1339_s2 + $0xcc] sm:$0xf0]  ;;  %v881_v30 = vld [vmem:[%s1339_s2 + $0xb8] sm:$0xf0]  ;;  %v753_v36 = vor.u32 %v883_v23, %v752_v22  ;;  %v661_v37 = vor.u32 %v858_v25, %v658_v26 }
  0x17   :  { %v748_v29 = vld [vmem:[%s1339_s2 + $0xb0] sm:$0xf]  ;;  %v905_v34 = vld [vmem:[%s1339_s2 + $0x178] sm:$0xf0]  ;;  %v757_v38 = vor.u32 %v882_v27, %v754_v28  ;;  %v1181_v41 = vpack.c.b16 %v88_v31, %v88_v31  ;;  %v736_v42 = vld [vmem:[%s1339_s2 + $0x98] sm:$0xf]  ;;  %v1189_v44 = vpack.c.b16 %v89_v35, %v89_v35 }
  0x18   :  { %355 = vmatpush.bf16.msra.mxu0 %v681_v4  ;;  %v844_v33 = vld [vmem:[%s1339_s2 + $0x170] sm:$0xf]  ;;  %v749_v39 = vor.u32 %v881_v30, %v748_v29  ;;  %v878_v43 = vld [vmem:[%s1339_s2 + $0xa0] sm:$0xf0]  ;;  %v832_v45 = vld [vmem:[%s1339_s2 + $0x158] sm:$0xf] }
  0x19   :  { %368 = vmatpush.bf16.msra.mxu1 %v777_v5  ;;  %381 = vmatpush.bf16.msra.mxu2 %v685_v6  ;;  %v845_v40 = vor.u32 %v905_v34, %v844_v33  ;;  %v902_v46 = vld [vmem:[%s1339_s2 + $0x160] sm:$0xf0] }
  0x1a   :  { %394 = vmatpush.bf16.msra.mxu3 %v781_v10 }
  0x1c   :  { %356 = vmatpush.bf16.msra.mxu0 %v669_v16 }
  0x1d   :  { %369 = vmatpush.bf16.msra.mxu1 %v765_v19  ;;  %382 = vmatpush.bf16.msra.mxu2 %v673_v20 }
  0x1e   :  { %395 = vmatpush.bf16.msra.mxu3 %v769_v24 }
  0x20   :  { %357 = vmatpush.bf16.msra.mxu0 %v657_v32 }
  0x21   :  { %370 = vmatpush.bf16.msra.mxu1 %v753_v36  ;;  %383 = vmatpush.bf16.msra.mxu2 %v661_v37 }
  0x22   :  { %11 = vsyncpa [#allocation4], 0  ;;  %396 = vmatpush.bf16.msra.mxu3 %v757_v38  ;;  %v737_v47 = vor.u32 %v878_v43, %v736_v42  ;;  %v833_v48 = vor.u32 %v902_v46, %v832_v45  ;;  %v724_v49 = vld [vmem:[%s1339_s2 + $0x80] sm:$0xf]  ;;  %v875_v50 = vld [vmem:[%s1339_s2 + $0x88] sm:$0xf0] }
  0x23   :  { %358 = vmatmul.bf16.vlgmr.msra.gmra.mxu0 %v1181_v41  ;;  %v820_v51 = vld [vmem:[%s1339_s2 + $0x140] sm:$0xf]  ;;  %v899_v52 = vld [vmem:[%s1339_s2 + $0x148] sm:$0xf0]  ;;  %v725_v53 = vor.u32 %v875_v50, %v724_v49  ;;  %v712_v55 = vld [vmem:[%s1339_s2 + $0x68] sm:$0xf] }
  0x24   :  { %402 = vmatpush.bf16.msrb.mxu0 %v749_v39  ;;  %371 = vmatmul.bf16.vlgmr.msra.gmra.mxu1 %v1189_v44  ;;  %v821_v54 = vor.u32 %v899_v52, %v820_v51  ;;  %v872_v56 = vld [vmem:[%s1339_s2 + $0x70] sm:$0xf0]  ;;  %v808_v57 = vld [vmem:[%s1339_s2 + $0x128] sm:$0xf]  ;;  %v700_v61 = vld [vmem:[%s1339_s2 + $0x50] sm:$0xf] }
  0x25   :  { %415 = vmatpush.bf16.msrb.mxu1 %v845_v40  ;;  %384 = vmatmul.bf16.vlgmr.msra.gmra.mxu2 %v1181_v41  ;;  %v896_v58 = vld [vmem:[%s1339_s2 + $0x130] sm:$0xf0]  ;;  %v713_v59 = vor.u32 %v872_v56, %v712_v55  ;;  %v869_v62 = vld [vmem:[%s1339_s2 + $0x58] sm:$0xf0]  ;;  %v796_v63 = vld [vmem:[%s1339_s2 + $0x110] sm:$0xf] }
  0x26   :  { %397 = vmatmul.bf16.vlgmr.msra.gmra.mxu3 %v1189_v44  ;;  %v809_v60 = vor.u32 %v896_v58, %v808_v57  ;;  %v893_v0 = vld [vmem:[%s1339_s2 + $0x118] sm:$0xf0]  ;;  %v701_v1 = vor.u32 %v869_v62, %v700_v61  ;;  %v688_v3 = vld [vmem:[%s1339_s2 + $0x38] sm:$0xf]  ;;  %v866_v4 = vld [vmem:[%s1339_s2 + $0x40] sm:$0xf0] }
  0x27   :  { %v797_v2 = vor.u32 %v893_v0, %v796_v63  ;;  %v784_v5 = vld [vmem:[%s1339_s2 + $0xf8] sm:$0xf]  ;;  %v890_v6 = vld [vmem:[%s1339_s2 + $0x100] sm:$0xf0]  ;;  %v689_v7 = vor.u32 %v866_v4, %v688_v3  ;;  %v676_v9 = vld [vmem:[%s1339_s2 + $0x20] sm:$0xf]  ;;  %v557_v4 = vlaneseq }
  0x28   :  { %403 = vmatpush.bf16.msrb.mxu0 %v737_v47  ;;  %v785_v8 = vor.u32 %v890_v6, %v784_v5  ;;  %v863_v10 = vld [vmem:[%s1339_s2 + $0x28] sm:$0xf0]  ;;  %v772_v11 = vld [vmem:[%s1339_s2 + $0xe0] sm:$0xf]  ;;  %v664_v15 = vld [vmem:[%s1339_s2 + $0x8] sm:$0xf] }
  0x29   :  { %416 = vmatpush.bf16.msrb.mxu1 %v833_v48  ;;  %v887_v12 = vld [vmem:[%s1339_s2 + $0xe8] sm:$0xf0]  ;;  %v677_v13 = vor.u32 %v863_v10, %v676_v9  ;;  %v860_v16 = vld [vmem:[%s1339_s2 + $0x10] sm:$0xf0]  ;;  %v760_v17 = vld [vmem:[%s1339_s2 + $0xc8] sm:$0xf] }
  0x2a   :  { %v773_v14 = vor.u32 %v887_v12, %v772_v11  ;;  %v884_v18 = vld [vmem:[%s1339_s2 + $0xd0] sm:$0xf0]  ;;  %v665_v19 = vor.u32 %v860_v16, %v664_v15  ;;  %s573_s10 = smul.u32 2654435769, %s1337_s0  ;;  %vm518_vm8 = vcmask 1040384   ;;  %vm520_vm10 = vcmask 1041408  }
  0x2b   :  { %v761_v20 = vor.u32 %v884_v18, %v760_v17  ;;  %s645_s1 = sshll.u32 %s1342_s5, 4  ;;  %s646_s1 = int_to_ptr.hbm [resolvable:$true] %s645_s1 }
  0x2c   :  { %404 = vmatpush.bf16.msrb.mxu0 %v725_v53 }
  0x2d   :  { %417 = vmatpush.bf16.msrb.mxu1 %v821_v54 }
  0x30   :  { %405 = vmatpush.bf16.msrb.mxu0 %v713_v59 }
  0x31   :  { %418 = vmatpush.bf16.msrb.mxu1 %v809_v60 }
  0x34   :  { %406 = vmatpush.bf16.msrb.mxu0 %v701_v1 }
  0x35   :  { %419 = vmatpush.bf16.msrb.mxu1 %v797_v2 }
  0x38   :  { %407 = vmatpush.bf16.msrb.mxu0 %v689_v7  ;;  %v558_v7 = vshrl.u32 %v557_v4, 7 }
  0x39   :  { %420 = vmatpush.bf16.msrb.mxu1 %v785_v8  ;;  %v560_v8 = vand.u32 127, %v557_v4 }
  0x3b   :  { %v561_v12 = vadd.s32 128, %v560_v8  ;;  %v562_v17 = vadd.s32 256, %v560_v8 }
  0x3c   :  { %408 = vmatpush.bf16.msrb.mxu0 %v677_v13  ;;  %v568_v13 = vmul.u32 384, %v558_v7 }
  0x3d   :  { %421 = vmatpush.bf16.msrb.mxu1 %v773_v14 }
  0x40   :  { %409 = vmatpush.bf16.msrb.mxu0 %v665_v19 }
  0x41   :  { %422 = vmatpush.bf16.msrb.mxu1 %v761_v20 }
  0x43   :  { %410 = vmatmul.bf16.vlgmr.msrb.gmra.mxu0 %v1181_v41 }
  0x44   :  { %423 = vmatmul.bf16.vlgmr.msrb.gmra.mxu1 %v1189_v44 }
  0xa0   :  { %v359_v21 = vpop.f32.mrf.mxu0 }
  0xa1   :  { %v372_v22 = vpop.f32.mrf.mxu1 }
  0xa2   :  { %v1275_v23 = vadd.f32 %v372_v22, %v359_v21  ;;  %v569_v22 = vadd.s32 %v568_v13, %v560_v8 }
  0xa4   :  { %v428_v24 = vrot.slane %v1275_v23, 4  ;;  %v446_v25 = vmul.f32 %v1275_v23, %v1275_v23 }
  0xa6   :  { %v429_v26 = vadd.f32 %v428_v24, %v1275_v23  ;;  %v449_v27 = vrot.slane %v446_v25, 4  ;;  %v570_v24 = vadd.s32 %v568_v13, %v561_v12 }
  0xa8   :  { %v385_v28 = vpop.f32.mrf.mxu2  ;;  %v361_v30 = vpop.f32.mrf.mxu0  ;;  %v430_v33 = vrot.slane %v429_v26, 2  ;;  %v450_v34 = vadd.f32 %v449_v27, %v446_v25 }
  0xa9   :  { %v398_v29 = vpop.f32.mrf.mxu3  ;;  %v374_v32 = vpop.f32.mrf.mxu1 }
  0xaa   :  { %v1281_v31 = vadd.f32 %v398_v29, %v385_v28  ;;  %v431_v39 = vadd.f32 %v430_v33, %v429_v26  ;;  %v451_v40 = vrot.slane %v450_v34, 2  ;;  %v571_v28 = vadd.s32 %v568_v13, %v562_v17 }
  0xab   :  { %v574_v29 = vstv %s573_s10 }
  0xac   :  { %v434_v35 = vrot.slane %v1281_v31, 4  ;;  %v447_v36 = vmul.f32 %v1281_v31, %v1281_v31  ;;  %v432_v47 = vrot.slane %v431_v39, 1  ;;  %v452_v48 = vadd.f32 %v451_v40, %v450_v34 }
  0xad   :  { %v575_v34 = vadd.s32 %v574_v29, %v569_v22 }
  0xae   :  { %v435_v37 = vadd.f32 %v434_v35, %v1281_v31  ;;  %v455_v38 = vrot.slane %v447_v36, 4  ;;  %v433_v53 = vadd.f32 %v432_v47, %v431_v39  ;;  %v453_v54 = vrot.slane %v452_v48, 1 }
  0xb0   :  { %v436_v41 = vrot.slane %v435_v37, 2  ;;  %v456_v42 = vadd.f32 %v455_v38, %v447_v36  ;;  %v387_v43 = vpop.f32.mrf.mxu2  ;;  %v454_v59 = vadd.f32 %v453_v54, %v452_v48  ;;  %v1291_v60 = vmul.f32 0.125, %v433_v53 }
  0xb1   :  { %v400_v44 = vpop.f32.mrf.mxu3  ;;  %v577_v38 = vadd.s32 %v574_v29, %v571_v28 }
  0xb2   :  { %v437_v45 = vadd.f32 %v436_v41, %v435_v37  ;;  %v457_v46 = vrot.slane %v456_v42, 2  ;;  %v470_v63 = vmul.f32 0.125, %v454_v59  ;;  %v473_v0 = vmul.f32 %v1291_v60, %v1291_v60 }
  0xb3   :  { %v576_v37 = vadd.s32 %v574_v29, %v570_v24 }
  0xb4   :  { %v438_v49 = vrot.slane %v437_v45, 1  ;;  %v458_v50 = vadd.f32 %v457_v46, %v456_v42  ;;  %v476_v9 = vsub.f32 %v470_v63, %v473_v0  ;;  %v846_v42 = vshrl.u32 %v575_v34, 16 }
  0xb5   :  { %v848_v46 = vshrl.u32 %v577_v38, 16 }
  0xb6   :  { %v439_v51 = vadd.f32 %v438_v49, %v437_v45  ;;  %v459_v52 = vrot.slane %v458_v50, 1  ;;  %v1307_v18 = vadd.f32 1e-05, %v476_v9  ;;  %v847_v45 = vshrl.u32 %v576_v37, 16 }
  0xb7   :  { %v584_v49 = vxor.u32 %v846_v42, %v575_v34 }
  0xb8   :  { %v460_v55 = vadd.f32 %v459_v52, %v458_v50  ;;  %v1287_v56 = vmul.f32 0.125, %v439_v51  ;;  %v585_v51 = vxor.u32 %v847_v45, %v576_v37  ;;  %v586_v52 = vxor.u32 %v848_v46, %v577_v38 }
  0xb9   :  { %v587_v54 = vmul.u32 2146121005, %v584_v49  ;;  %vm489_vm4 = vweird.f32 %v1307_v18 }
  0xba   :  { %v471_v57 = vmul.f32 0.125, %v460_v55  ;;  %v474_v58 = vmul.f32 %v1287_v56, %v1287_v56 }
  0xbb   :  { %v849_v63 = vshrl.u32 %v587_v54, 15 }
  0xbc   :  { %v477_v61 = vsub.f32 %v471_v57, %v474_v58  ;;  %v588_v57 = vmul.u32 2146121005, %v585_v51  ;;  %v589_v58 = vmul.u32 2146121005, %v586_v52 }
  0xbd   :  { %v596_v8 = vxor.u32 %v849_v63, %v587_v54 }
  0xbe   :  { %v1295_v2 = vadd.f32 1e-05, %v477_v61  ;;  %v851_v4 = vshrl.u32 %v589_v58, 15 }
  0xc0   :  { %v411_v62 = vpop.f32.mrf.mxu0  ;;  %909 = vrsqrt.f32 %v1295_v2  ;;  %vm499_vm0 = vweird.f32 %v1295_v2 }
  0xc1   :  { %v424_v1 = vpop.f32.mrf.mxu1  ;;  %911 = vrsqrt.f32 %v1307_v18 }
  0xc2   :  { %v1297_v3 = vadd.f32 %v424_v1, %v411_v62  ;;  %v850_v1 = vshrl.u32 %v588_v57, 15 }
  0xc4   :  { %v440_v5 = vrot.slane %v1297_v3, 4  ;;  %v448_v6 = vmul.f32 %v1297_v3, %v1297_v3 }
  0xc6   :  { %v441_v10 = vadd.f32 %v440_v5, %v1297_v3  ;;  %v461_v11 = vrot.slane %v448_v6, 4  ;;  %v910_v25 = vpop.eup %909 }
  0xc7   :  { %v494_v33 = vmul.f32 %v910_v25, %v1295_v2  ;;  %v912_v41 = vpop.eup %911  ;;  %vm500_vm1 = vweird.f32 %v910_v25 }
  0xc8   :  { %v442_v14 = vrot.slane %v441_v10, 2  ;;  %v462_v15 = vadd.f32 %v461_v11, %v448_v6  ;;  %v413_v16 = vpop.f32.mrf.mxu0  ;;  %v484_v47 = vmul.f32 %v912_v41, %v1307_v18  ;;  %vm501_vm2 = vmor %vm499_vm0, %vm500_vm1  ;;  %v598_v11 = vxor.u32 %v851_v4, %v589_v58 }
  0xc9   :  { %v426_v19 = vpop.f32.mrf.mxu1  ;;  %v495_v43 = vmul.f32 %v910_v25, %v494_v33  ;;  %vm490_vm5 = vweird.f32 %v912_v41 }
  0xca   :  { %v443_v20 = vadd.f32 %v442_v14, %v441_v10  ;;  %v463_v21 = vrot.slane %v462_v15, 2  ;;  %v485_v53 = vmul.f32 %v912_v41, %v484_v47  ;;  %v597_v10 = vxor.u32 %v850_v1, %v588_v57  ;;  %vm491_vm9 = vmor %vm489_vm4, %vm490_vm5 }
  0xcb   :  { %v496_v50 = vmul.f32 0.5, %v495_v43  ;;  %v601_v17 = vmul.u32 2221713035, %v598_v11  ;;  %v524_v43 = vld [vmem:[%s1341_s4] sm:$0x7]  ;;  %s943_s4 = smov [#allocation3]  }
  0xcc   :  { %v444_v26 = vrot.slane %v443_v20, 1  ;;  %v464_v27 = vadd.f32 %v463_v21, %v462_v15  ;;  %v486_v61 = vmul.f32 0.5, %v485_v53  ;;  %v599_v15 = vmul.u32 2221713035, %v596_v8  ;;  %s643_s13 = sshll.u32 %s943_s4, 4  ;;  %s644_s13 = int_to_ptr.vmem [resolvable:$true] %s643_s13 }
  0xcd   :  { %v497_v55 = vsub.f32 1.5, %v496_v50  ;;  %v600_v16 = vmul.u32 2221713035, %v597_v10 }
  0xce   :  { %v445_v30 = vadd.f32 %v444_v26, %v443_v20  ;;  %v465_v32 = vrot.slane %v464_v27, 1  ;;  %v487_v6 = vsub.f32 1.5, %v486_v61  ;;  %v479_v20 = vld [vmem:[%s1340_s3] sm:$0x7]  ;;  %v852_v24 = vshrl.u32 %v599_v15, 16 }
  0xcf   :  { %v498_v0 = vmul.f32 %v910_v25, %v497_v55  ;;  %v853_v26 = vshrl.u32 %v600_v16, 16  ;;  %v941_v55 = vmov 0.0  }
  0xd0   :  { %v466_v35 = vadd.f32 %v465_v32, %v464_v27  ;;  %v1311_v36 = vmul.f32 0.125, %v445_v30  ;;  %v488_v13 = vmul.f32 %v912_v41, %v487_v6  ;;  %v854_v27 = vshrl.u32 %v601_v17, 16 }
  0xd1   :  { %v502_v9 = vsel %vm501_vm2, %v910_v25, %v498_v0  ;;  %v608_v33 = vxor.u32 %v852_v24, %v599_v15  ;;  %v609_v34 = vxor.u32 %v853_v26, %v600_v16 }
  0xd2   :  { %v472_v39 = vmul.f32 0.125, %v466_v35  ;;  %v475_v40 = vmul.f32 %v1311_v36, %v1311_v36  ;;  %v516_v14 = vrot.slane %v502_v9, 7  ;;  %v492_v21 = vsel %vm491_vm9, %v912_v41, %v488_v13 }
  0xd3   :  { %v610_v35 = vxor.u32 %v854_v27, %v601_v17  ;;  %v855_v42 = vshrl.u32 %v608_v33, 8 }
  0xd4   :  { %v478_v44 = vsub.f32 %v472_v39, %v475_v40  ;;  %v519_v18 = vsel %vm518_vm8, %v492_v21, %v516_v14 }
  0xd5   :  { %v857_v45 = vshrl.u32 %v610_v35, 8  ;;  %vm617_vm11 = vcmp.lt.s32.totalorder %v855_v42, 13421772 }
  0xd6   :  { %v482_v48 = vadd.f32 1e-05, %v478_v44  ;;  %v856_v44 = vshrl.u32 %v609_v34, 8  ;;  %v620_v57 = vsel %vm617_vm11, 1.25, %v941_v55 }
  0xd7   :  { %vm619_vm13 = vcmp.lt.s32.totalorder %v857_v45, 13421772 }
  0xd8   :  { %913 = vrsqrt.f32 %v482_v48  ;;  %vm509_vm6 = vweird.f32 %v482_v48  ;;  %vm618_vm12 = vcmp.lt.s32.totalorder %v856_v44, 13421772 }
  0xd9   :  { %v621_v58 = vsel %vm618_vm12, 1.25, %v941_v55 }
  0xde   :  { %v914_v59 = vpop.eup %913 }
  0xdf   :  { %v504_v62 = vmul.f32 %v914_v59, %v482_v48  ;;  %vm510_vm3 = vweird.f32 %v914_v59 }
  0xe0   :  { %vm511_vm7 = vmor %vm509_vm6, %vm510_vm3 }
  0xe1   :  { %v505_v5 = vmul.f32 %v914_v59, %v504_v62 }
  0xe3   :  { %v506_v7 = vmul.f32 0.5, %v505_v5 }
  0xe5   :  { %v507_v12 = vsub.f32 1.5, %v506_v7 }
  0xe7   :  { %v508_v2 = vmul.f32 %v914_v59, %v507_v12 }
  0xe9   :  { %v512_v19 = vsel %vm511_vm7, %v914_v59, %v508_v2  ;;  %v622_v59 = vsel %vm619_vm13, 1.25, %v941_v55 }
  0xea   :  { %v517_v22 = vrot.slane %v512_v19, 6 }
  0xec   :  { %v521_v25 = vsel %vm520_vm10, %v519_v18, %v517_v22 }
  0xed   :  { %v523_v28 = vmul.f32 %v521_v25, %v479_v20 }
  0xef   :  { %v526_v29 = vperm.slane %v523_v28, 0  ;;  %v527_v30 = vperm.slane %v523_v28, 1  ;;  %v528_v32 = vperm.slane %v523_v28, 2 }
  0xf1   :  { %v533_v37 = vmul.f32 %v527_v30, %v1287_v56  ;;  %v534_v38 = vmul.f32 %v528_v32, %v1311_v36  ;;  %v532_v39 = vmul.f32 %v526_v29, %v1291_v60  ;;  %v546_v56 = vmul.f32 %v528_v32, %v1297_v3 }
  0xf2   :  { %v544_v36 = vmul.f32 %v526_v29, %v1275_v23  ;;  %v545_v49 = vmul.f32 %v527_v30, %v1281_v31  ;;  %v942_v3 = vmov 0.01  }
  0xf3   :  { %v538_v40 = vrot.slane %v533_v37, 7  ;;  %v539_v41 = vrot.slane %v534_v38, 6 }
  0xf5   :  { %v540_v46 = vsel %vm518_vm8, %v532_v39, %v538_v40 }
  0xf6   :  { %v541_v47 = vsel %vm520_vm10, %v540_v46, %v539_v41 }
  0xf7   :  { %v543_v48 = vsub.f32 %v524_v43, %v541_v47 }
  0xf9   :  { %v550_v60 = vperm.slane %v543_v48, 2  ;;  %v548_v50 = vperm.slane %v543_v48, 0  ;;  %v549_v51 = vperm.slane %v543_v48, 1 }
  0xfb   :  { %v556_v52 = vadd.f32 %v550_v60, %v546_v56  ;;  %v554_v53 = vadd.f32 %v548_v50, %v544_v36  ;;  %v555_v54 = vadd.f32 %v549_v51, %v545_v49 }
  0xfd   :  { %vm625_vm14 = vcmp.ge.f32.partialorder %v556_v52, 0.0  ;;  %vm623_vm15 = vcmp.ge.f32.partialorder %v554_v53, 0.0  ;;  %vm624_vm0 = vcmp.ge.f32.partialorder %v555_v54, 0.0 }
  0xfe   :  { %v626_v61 = vsel %vm623_vm15, 1.0, %v942_v3  ;;  %v627_v23 = vsel %vm624_vm0, 1.0, %v942_v3  ;;  %v628_v62 = vsel %vm625_vm14, 1.0, %v942_v3 }
  0xff   :  { %v629_v63 = vmul.f32 %v626_v61, %v620_v57  ;;  %v630_v0 = vmul.f32 %v627_v23, %v621_v58  ;;  %v631_v1 = vmul.f32 %v628_v62, %v622_v59 }
 0x101   :  { %v632_v31 = vmul.f32 %v629_v63, %v554_v53  ;;  %v633_v4 = vmul.f32 %v630_v0, %v555_v54  ;;  %v634_v5 = vmul.f32 %v631_v1, %v556_v52 }
 0x103   :  { %635 = vst [vmem:[#allocation3] sm:$0xff] %v632_v31 }
 0x104   :  { %636 = vst [vmem:[#allocation3 + $0x8] sm:$0xff] %v633_v4 }
 0x105   :  { %637 = vst [vmem:[#allocation3 + $0x10] sm:$0xff] %v634_v5 }
 0x106   :  { %648 = dma.vmem_to_hbm [thread:$0]  %s644_s13, 384, %s646_s1, [#allocation4]  }
 0x107   :  { %939 = dma.done.wait [#allocation4], 384  }
 0x108   :  { %940 = vsyncadd [#allocation4], 4294966912 }
 0x109   :  { %653 = vsyncpa [#allocation4], 1 }

</bundles_post_ra>
